<compile_context>
chip_gen: v7x
topology: tpu7x:2x2x1
jax: 0.10.0
libtpu: 0.0.40
codegen_flags: <defaults>
</compile_context>

<pallas_src>
import functools

import jax
import jax.numpy as jnp
from jax.experimental import pallas as pl
from jax.experimental.pallas import tpu as pltpu


def _focal_loss_kernel(logits_ref, targets_ref, partial_ref, *, block_n, n_rows):
    # logits_ref:  (block_n, C) float VMEM (f32 or bf16)
    # targets_ref: (block_n, 1) int32 VMEM
    # partial_ref: (1, 1) f32 SMEM output block -> per-block CE sum
    pid = pl.program_id(0)

    x = logits_ref[...]                                   # (block_n, C), input dtype
    t = targets_ref[...]                                  # (block_n, 1) int32

    # Numerically-stable per-row logsumexp.  max / subtract stay in the input
    # dtype (cheap bf16 VPU passes on v6e/v7x); exp + lane-sum + log in f32.
    row_max = jnp.max(x, axis=-1, keepdims=True)                        # (block_n, 1)
    p = jnp.exp((x - row_max).astype(jnp.float32))                      # (block_n, C) f32
    lse = row_max.astype(jnp.float32) + jnp.log(
        jnp.sum(p, axis=-1, keepdims=True))                             # (block_n, 1) f32

    # Gather the target logit with a broadcast-compare one-hot select in the
    # input dtype (exactly one nonzero per row, so the lane sum is exact).
    col_ids = jax.lax.broadcasted_iota(jnp.int32, x.shape, 1)           # (block_n, C)
    tgt_logit = jnp.sum(jnp.where(col_ids == t, x, jnp.zeros_like(x)),
                        axis=-1, keepdims=True).astype(jnp.float32)     # (block_n, 1)

    # Padded rows of the final partial block produce garbage lse/tgt_logit,
    # but it is row-local and the select below discards it — no full-tile
    # masking pass needed.
    row_ids = pid * block_n + jax.lax.broadcasted_iota(
        jnp.int32, (block_n, 1), 0)                                     # (block_n, 1)
    ce_per_row = jnp.where(row_ids < n_rows, lse - tgt_logit, 0.0)      # (block_n, 1)

    partial_ref[0, 0] = jnp.sum(ce_per_row)


def _vmem_budget():
    """Pick (logits-tile target bytes, vmem_limit_bytes) from on-chip VMEM."""
    cap = None
    try:
        cap = int(getattr(pltpu.get_tpu_info(), "vmem_capacity_bytes", 0)) or None
    except Exception:
        cap = None
    if cap is not None and cap >= 100 * 1024 * 1024:
        # v5e / v6e: 128 MiB physical VMEM -> bigger tiles amortize the fixed
        # ~0.35 us/step grid overhead (measured 85%+ of HBM roofline).
        return 8 * 1024 * 1024, 64 * 1024 * 1024
    # v7x (64 MiB per TC) or unknown: keep double-buffered input tile +
    # ~3x f32 intermediates + lane-padded targets well under the limit.
    return 4 * 1024 * 1024, 48 * 1024 * 1024


def _choose_block_n(n, c, itemsize, target_bytes):
    """Large row-block with dtype-aware sublane alignment."""
    bn = max(1, target_bytes // max(1, c * itemsize))
    bn = min(int(bn), 2048, n)
    if bn < n:
        # (8,128) packing rule: 8 sublanes for 4-byte, 16 rows/sublane-pair for
        # bf16, 32 for 1-byte dtypes.
        sub = max(8, 32 // max(1, itemsize))
        bn = max(sub, (bn // sub) * sub)
    return int(bn)


def focal_loss(logits, targets, *, alpha=0.25, gamma=2, reduction=True,
               block_n=None):
    """logits: (N, C) float (f32 or bf16), targets: (N,) int class indices."""
    n, c = logits.shape
    targets_2d = targets.astype(jnp.int32).reshape(n, 1)

    itemsize = jnp.dtype(logits.dtype).itemsize
    target_tile_bytes, vmem_limit = _vmem_budget()
    if block_n is None:
        block_n = _choose_block_n(n, c, itemsize, target_tile_bytes)
    block_n = int(block_n)
    grid_n = pl.cdiv(n, block_n)

    kernel = functools.partial(_focal_loss_kernel, block_n=block_n, n_rows=n)

    cost = pl.CostEstimate(
        flops=5 * n * c,
        transcendentals=n * c,
        bytes_accessed=n * c * itemsize + n * 4 + grid_n * 4,
    )

    partials = pl.pallas_call(
        kernel,
        out_shape=jax.ShapeDtypeStruct((grid_n, 1), jnp.float32),
        grid_spec=pltpu.PrefetchScalarGridSpec(
            num_scalar_prefetch=0,
            grid=(grid_n,),
            in_specs=[
                pl.BlockSpec((block_n, c), lambda i: (i, 0)),   # logits tile
                pl.BlockSpec((block_n, 1), lambda i: (i, 0)),   # targets tile
            ],
            out_specs=pl.BlockSpec((1, 1), lambda i: (i, 0),
                                   memory_space=pltpu.SMEM),
        ),
        compiler_params=pltpu.CompilerParams(
            dimension_semantics=("parallel",),   # no cross-step carry anymore
            vmem_limit_bytes=vmem_limit,
        ),
        cost_estimate=cost,
    )(logits, targets_2d)

    # Final reduction + focal transform on grid_n floats in plain JAX.
    ce = jnp.sum(partials) / jnp.float32(n)
    pt = jnp.exp(-ce)
    result = jnp.float32(alpha) * (1.0 - pt) ** gamma * ce
    # reduction=True -> mean of a scalar == the scalar; CE is already reduced,
    # so both branches of the PyTorch module return the same value.
    return result


def _reference_focal_loss(logits, targets, alpha=0.25, gamma=2):
    logits = logits.astype(jnp.float32)
    logp = jax.nn.log_softmax(logits, axis=-1)
    ce = -jnp.mean(jnp.take_along_axis(logp, targets[:, None].astype(jnp.int32),
                                       axis=-1))
    pt = jnp.exp(-ce)
    return alpha * (1.0 - pt) ** gamma * ce


if __name__ == "__main__":
    key = jax.random.PRNGKey(0)
    k1, k2, k3, k4, k5, k6 = jax.random.split(key, 6)

    # Primary small case: 8 samples, 32 classes (single block).
    N, C = 8, 32
    logits = jax.random.normal(k1, (N, C), dtype=jnp.float32)
    targets = jax.random.randint(k2, (N,), 0, C, dtype=jnp.int32)

    loss = focal_loss(logits, targets, alpha=0.25, gamma=2, reduction=True)
    loss = jax.block_until_ready(loss)
    ref = _reference_focal_loss(logits, targets, alpha=0.25, gamma=2)
    assert jnp.allclose(loss, ref, atol=1e-5, rtol=1e-5), (loss, ref)

    # Tiled case exercising the grid + partial-block masking: 20 rows, block_n=8.
    N2, C2 = 20, 128
    logits2 = jax.random.normal(k3, (N2, C2), dtype=jnp.float32)
    targets2 = jax.random.randint(k4, (N2,), 0, C2, dtype=jnp.int32)

    loss2 = focal_loss(logits2, targets2, alpha=0.25, gamma=2, block_n=8)
    loss2 = jax.block_until_ready(loss2)
    ref2 = _reference_focal_loss(logits2, targets2, alpha=0.25, gamma=2)
    assert jnp.allclose(loss2, ref2, atol=1e-5, rtol=1e-5), (loss2, ref2)

    # bf16 streaming path (encouraged input dtype) with tiling + partial block.
    N3, C3 = 300, 256
    logits3 = jax.random.normal(k5, (N3, C3), dtype=jnp.float32).astype(jnp.bfloat16)
    targets3 = jax.random.randint(k6, (N3,), 0, C3, dtype=jnp.int32)

    loss3 = focal_loss(logits3, targets3, alpha=0.25, gamma=2, block_n=16)
    loss3 = jax.block_until_ready(loss3)
    ref3 = _reference_focal_loss(logits3, targets3, alpha=0.25, gamma=2)
    assert jnp.allclose(loss3, ref3, atol=1e-3, rtol=2e-2), (loss3, ref3)

    print("KERNEL_OK")
</pallas_src>

<mosaic_0001>
module attributes {stable_mosaic.version = 11 : i64} {
  func.func @_focal_loss_kernel(%arg0: i32, %arg1: memref<8x32xf32, #tpu.memory_space<vmem>>, %arg2: memref<8x1xi32, #tpu.memory_space<vmem>>, %arg3: memref<1x1xf32, #tpu.memory_space<smem>>) attributes {dimension_semantics = [#tpu.dimension_semantics<parallel>], iteration_bounds = array<i64: 1>, scalar_prefetch = 0 : i64, scratch_operands = 0 : i64, tpu.core_type = #tpu.core_type<tc>, window_params = [{transform_indices = @transform_0, window_bounds = array<i64: 8, 32>}, {transform_indices = @transform_1, window_bounds = array<i64: 8, 1>}, {transform_indices = @transform_2, window_bounds = array<i64: 1, 1>}]} {
    %c0 = arith.constant 0 : index
    %c0_0 = arith.constant 0 : index
    %0 = vector.load %arg1[%c0, %c0_0] : memref<8x32xf32, #tpu.memory_space<vmem>>, vector<8x32xf32>
    %c0_1 = arith.constant 0 : index
    %c0_2 = arith.constant 0 : index
    %1 = vector.load %arg2[%c0_1, %c0_2] : memref<8x1xi32, #tpu.memory_space<vmem>>, vector<8x1xi32>
    %cst = arith.constant dense<0xFF800000> : vector<8xf32>
    %2 = vector.multi_reduction <maximumf>, %0, %cst [1] : vector<8x32xf32> to vector<8xf32>
    %3 = vector.shape_cast %2 : vector<8xf32> to vector<8x1xf32>
    %4 = vector.broadcast %3 : vector<8x1xf32> to vector<8x32xf32>
    %5 = arith.subf %0, %4 : vector<8x32xf32>
    %6 = math.exp %5 : vector<8x32xf32>
    %cst_3 = arith.constant dense<0.000000e+00> : vector<8xf32>
    %7 = vector.multi_reduction <add>, %6, %cst_3 [1] : vector<8x32xf32> to vector<8xf32>
    %8 = vector.shape_cast %7 : vector<8xf32> to vector<8x1xf32>
    %9 = math.log %8 : vector<8x1xf32>
    %10 = arith.addf %3, %9 : vector<8x1xf32>
    %11 = tpu.iota {dimensions = array<i32: 1>} : vector<8x32xi32>
    %12 = vector.broadcast %1 : vector<8x1xi32> to vector<8x32xi32>
    %13 = arith.cmpi eq, %11, %12 : vector<8x32xi32>
    %cst_4 = arith.constant 0.000000e+00 : f32
    %14 = vector.broadcast %cst_4 : f32 to vector<8x32xf32>
    %15 = arith.select %13, %0, %14 : vector<8x32xi1>, vector<8x32xf32>
    %cst_5 = arith.constant dense<0.000000e+00> : vector<8xf32>
    %16 = vector.multi_reduction <add>, %15, %cst_5 [1] : vector<8x32xf32> to vector<8xf32>
    %17 = vector.shape_cast %16 : vector<8xf32> to vector<8x1xf32>
    %c8_i32 = arith.constant 8 : i32
    %18 = arith.muli %arg0, %c8_i32 : i32
    %19 = tpu.iota {dimensions = array<i32: 0>} : vector<8x1xi32>
    %20 = vector.broadcast %18 : i32 to vector<8x1xi32>
    %21 = arith.addi %20, %19 : vector<8x1xi32>
    %c8_i32_6 = arith.constant 8 : i32
    %22 = vector.broadcast %c8_i32_6 : i32 to vector<8x1xi32>
    %23 = arith.cmpi slt, %21, %22 : vector<8x1xi32>
    %24 = arith.subf %10, %17 : vector<8x1xf32>
    %cst_7 = arith.constant 0.000000e+00 : f32
    %25 = vector.broadcast %cst_7 : f32 to vector<8x1xf32>
    %26 = arith.select %23, %24, %25 : vector<8x1xi1>, vector<8x1xf32>
    %27 = vector.shape_cast %26 : vector<8x1xf32> to vector<1x8x1xf32>
    %cst_8 = arith.constant dense<0.000000e+00> : vector<1xf32>
    %28 = vector.multi_reduction <add>, %27, %cst_8 [1, 2] : vector<1x8x1xf32> to vector<1xf32>
    %29 = vector.shape_cast %28 : vector<1xf32> to vector<1x1x1xf32>
    %30 = vector.extract %29[0, 0, 0] : f32 from vector<1x1x1xf32>
    %c0_9 = arith.constant 0 : index
    %c0_10 = arith.constant 0 : index
    %31 = memref.load %arg3[%c0_9, %c0_10] : memref<1x1xf32, #tpu.memory_space<smem>>
    memref.store %30, %arg3[%c0_9, %c0_10] : memref<1x1xf32, #tpu.memory_space<smem>>
    return
  }
  func.func @transform_0(%arg0: i32) -> (i32, i32) {
    %c0_i32 = arith.constant 0 : i32
    %c0_i32_0 = arith.constant 0 : i32
    return %arg0, %c0_i32 : i32, i32
  }
  func.func @transform_1(%arg0: i32) -> (i32, i32) {
    %c0_i32 = arith.constant 0 : i32
    %c0_i32_0 = arith.constant 0 : i32
    return %arg0, %c0_i32 : i32, i32
  }
  func.func @transform_2(%arg0: i32) -> (i32, i32) {
    %c0_i32 = arith.constant 0 : i32
    %c0_i32_0 = arith.constant 0 : i32
    return %arg0, %c0_i32 : i32, i32
  }
}

</mosaic_0001>

<bundles_post_ra>
// kernel: tpu_custom_call.1
= control target key start
LH: loop header
LB: loop body
LE: loop exit
PB: predicated region body
PF: predicated region fallthrough
CT: control target
= control target key end

     0   :  { %vm14_vm0 = vcmask 261120   ;;  %s130_s0 = inlined_call_operand.vmem [shape: f32[8,32], index: 0, kind: input, shape index: {}]   ;;  %s131_s1 = inlined_call_operand.vmem [shape: s32[8,1], index: 1, kind: input, shape index: {}]   ;;  %s132_s2 = inlined_call_operand.hbm [shape: f32[1,1], index: 2, kind: output, shape index: {}]  }
   0x1   :  { %v12_v0 = vld [vmem:[%s130_s0] sm:$0xff] }
   0x2   :  { %7 = vsyncpa [#allocation3], 0  ;;  %v15_v1 = vsel %vm14_vm0, %v12_v0, -inf  ;;  %v92_v2 = vmov 0   ;;  %v13_v3 = vld [vmem:[%s131_s1] sm:$0xff]  ;;  %v27_v7 = vlaneseq  ;;  %vm45_vm2 = vcmask 7168  }
   0x3   :  { %75 = vset.pattern.permute.xlu0 %v92_v2  ;;  %s80_s14 = scalar_lea.hbm %s132_s2, 16 }
   0x4   :  { %16 = vmax.xlane.f32.xlu0 %v15_v1  ;;  %v28_v8 = vand.u32 127, %v27_v7  ;;  %p81_p0 = scmp.ne.s32.totalorder %s132_s2, %s80_s14  ;;  %p84_p1 = scmp.lt.u32.totalorder %s80_s14, %s132_s2 }
   0x6   :  { %p86_p2 = pnand %p84_p1, %p81_p0 }
  0x1a   :  { %30 = vperm.xlu0 %75, %v13_v3  }
  0x91   :  { %v17_v4 = vpop.xlane.xlu0 %16 }
  0x92   :  { %v18_v5 = vsub.f32 %v12_v0, %v17_v4 }
  0x94   :  { %v19_v6 = vmul.f32 1.442695, %v18_v5 }
  0x96   :  { %76 = vpow2.f32 %v19_v6 }
  0x99   :  { %v31_v9 = vpop.permute.xlu0 %30 }
  0x9a   :  { %vm32_vm1 = vcmp.eq.s32.totalorder %v28_v8, %v31_v9 }
  0x9b   :  { %v33_v11 = vsel %vm32_vm1, %v12_v0, 0.0 }
  0x9c   :  { %v34_v13 = vsel %vm14_vm0, %v33_v11, 0.0 }
  0xa0   :  { %v77_v10 = vpop.eup %76 }
  0xa1   :  { %v21_v12 = vsel %vm14_vm0, %v77_v10, 0.0 }
  0xa2   :  { %22 = vadd.xlane.f32.xlu1 %v21_v12 }
  0xa6   :  { %35 = vadd.xlane.f32.xlu1 %v34_v13 }
 0x12f   :  { %v23_v14 = vpop.xlane.xlu1 %22 }
 0x130   :  { %78 = vlog2.f32 %v23_v14 }
 0x133   :  { %v36_v17 = vpop.xlane.xlu1 %35 }
 0x13a   :  { %v79_v15 = vpop.eup %78 }
 0x13b   :  { %v25_v16 = vmul.f32 0.6931472, %v79_v15 }
 0x13d   :  { %v26_v18 = vadd.f32 %v25_v16, %v17_v4 }
 0x13f   :  { %v43_v19 = vsub.f32 %v26_v18, %v36_v17 }
 0x141   :  { %v46_v20 = vsel %vm45_vm2, %v43_v19, 0.0 }
 0x142   :  { %47 = vadd.xlane.f32.xlu1 %v46_v20 }
 0x1cf   :  { %v48_v21 = vpop.xlane.xlu1 %47 }
 0x1d0   :  { %v49_v22 = vrot.slane %v48_v21, 4 }
 0x1d2   :  { %v50_v23 = vadd.f32 %v49_v22, %v48_v21 }
 0x1d4   :  { %v51_v24 = vrot.slane %v50_v23, 2 }
 0x1d6   :  { %v52_v25 = vadd.f32 %v51_v24, %v50_v23 }
 0x1d8   :  { %v53_v26 = vrot.slane %v52_v25, 1 }
 0x1da   :  { %v54_v27 = vadd.f32 %v53_v26, %v52_v25 }
 0x1dc   :  { %71 = vpush %v54_v27 }
 0x20d   :  { %s72_s0 = spop %71 }
 0x20e   :  { %57 = sst [smem:[#allocation2]] %s72_s0 }
 0x20f   :  { %89 = shalt.err (!%p86_p2)
}
 0x210   :  { %s93_s19 = smov [#allocation2]  }
 0x211   :  { %65 = dma.smem_to_hbm %s93_s19, 16, %s132_s2, [#allocation3]  }
 0x212   :  { %90 = dma.done.wait [#allocation3], 16  }
 0x213   :  { %91 = vsyncadd [#allocation3], 4294967280 }
 0x214   :  { %69 = sfence }
 0x215   :  { %70 = vsyncpa [#allocation3], 1 }

</bundles_post_ra>
